<compile_context>
chip_gen: v6e
topology: v6e:2x2x1
jax: 0.10.0
libtpu: 0.0.40
codegen_flags: <defaults>
</compile_context>

<pallas_src>
import functools

import jax
import jax.numpy as jnp
from jax.experimental import pallas as pl
from jax.experimental.pallas import tpu as pltpu

_LANE = 128          # lane width; class/hidden dims padded to this at prep time
_SUBLANE = 8         # sublane granularity for the batch tile
_NEG_BIG = -1.0e30   # class-pad bias: exp(pad - max) underflows to exactly 0


def _round_up(v, m):
    return ((v + m - 1) // m) * m


def mlp_softmax_kernel(x_ref, w1_ref, b1_ref, w2_ref, b2_ref, o_ref):
    """Fused linear -> sigmoid -> linear -> softmax for one (tile_b, F) batch tile.

    w1/b1 are zero-padded to HP lanes (sigmoid(0)=0.5 hits zero rows of w2p ->
    no effect); w2/b2 are padded to 128 lanes (zero weights / -1e30 bias) so the
    logits / exp / reduce path is fully lane-dense.  Only the first `num_classes`
    columns are stored.
    """
    x = x_ref[...]  # f32 already

    # input_layer: (TB, F) @ (F, HP) + (1, HP)
    h = jnp.dot(x, w1_ref[...], preferred_element_type=jnp.float32) + b1_ref[...]

    # sigmoid via tanh: single EUP push per element, no VALU divide
    h = 0.5 * (jnp.tanh(0.5 * h) + 1.0)

    # output_layer against the 128-lane-padded weight/bias
    logits = jnp.dot(h, w2_ref[...], preferred_element_type=jnp.float32) + b2_ref[...]

    # numerically stable softmax over the lane-dense padded class axis
    m = jnp.max(logits, axis=-1, keepdims=True)
    e = jnp.exp(logits - m)
    denom = jnp.sum(e, axis=-1, keepdims=True)
    probs = e * pl.reciprocal(denom, approx=True)  # EUP reciprocal, VALU stays free

    nc = o_ref.shape[-1]
    o_ref[...] = probs[:, :nc].astype(o_ref.dtype)  # store only the real classes


def prepare_params(w1, b1, w2, b2):
    """One-time packing of the Linear params for the fused kernel (hoisted out of
    the per-call forward).

    Inputs are stored for x @ W convention (i.e. transposed vs PyTorch's (out,in)):
      w1: (F, H), b1: (H,) or (1, H), w2: (H, C), b2: (C,) or (1, C).

    Returns lane-dense padded params (w1p, b1p, w2p, b2p, num_classes):
      w1p (F, HP) zero-padded cols, b1p (1, HP) zero-padded,
      w2p (HP, 128) zero-padded rows/cols, b2p (1, 128) with -1e30 on pad cols.
    Hidden pad: sigmoid(0)=0.5 multiplies zero rows of w2p -> logits unchanged.
    Class pad: zero weights + -1e30 bias -> vanish under softmax.
    """
    F, H = w1.shape
    C = w2.shape[-1]
    assert C <= _LANE
    HP = max(_LANE, _round_up(H, _LANE))
    b1 = jnp.reshape(jnp.asarray(b1, jnp.float32), (1, H))
    b2 = jnp.reshape(jnp.asarray(b2, jnp.float32), (1, C))
    w1p = jnp.zeros((F, HP), jnp.float32).at[:, :H].set(w1.astype(jnp.float32))
    b1p = jnp.zeros((1, HP), jnp.float32).at[:, :H].set(b1)
    w2p = jnp.zeros((HP, _LANE), jnp.float32).at[:H, :C].set(w2.astype(jnp.float32))
    b2p = jnp.full((1, _LANE), _NEG_BIG, jnp.float32).at[:, :C].set(b2)
    return w1p, b1p, w2p, b2p, C


def _choose_tile_b(B, F, max_tile_b):
    """Batch tile: as large as possible, VMEM-aware, and >=2 tiles for mid/large B
    so v7x's two TensorCores both get grid steps."""
    # double-buffered f32 x tile budget (~8 MiB) keeps us well inside the 32 MiB
    # scoped-VMEM default even on v7x (64 MiB physical) for large input_size.
    cap_vmem = max(_SUBLANE, (8 << 20) // max(F * 4 * 2, 1))
    tile = min(B, max_tile_b, cap_vmem)
    if B > 256:
        tile = min(tile, -(-B // 2))  # ceil(B/2): guarantees >= 2 grid steps
    return max(_SUBLANE, _round_up(tile, _SUBLANE))


def base_model_forward(x, w1p, b1p, w2p, b2p, num_classes=3, *, max_tile_b=2048):
    """x: (B, input_size); pre-padded params from prepare_params().
    Returns (B, num_classes) softmax probabilities (PyTorch BaseModel.forward)."""
    B, F = x.shape
    HP = w1p.shape[1]
    x = x.astype(jnp.float32)

    tile_b = _choose_tile_b(B, F, max_tile_b)
    Bp = _round_up(B, tile_b)
    xp = x if Bp == B else jnp.pad(x, ((0, Bp - B), (0, 0)))  # only on ragged B

    grid = (Bp // tile_b,)
    out = pl.pallas_call(
        mlp_softmax_kernel,
        out_shape=jax.ShapeDtypeStruct((Bp, num_classes), jnp.float32),
        grid_spec=pltpu.PrefetchScalarGridSpec(
            num_scalar_prefetch=0,
            grid=grid,
            in_specs=[
                pl.BlockSpec((tile_b, F), lambda i: (i, 0)),    # x: tiled over batch
                pl.BlockSpec((F, HP), lambda i: (0, 0)),        # w1p: full, resident
                pl.BlockSpec((1, HP), lambda i: (0, 0)),        # b1p
                pl.BlockSpec((HP, _LANE), lambda i: (0, 0)),    # w2p (128-lane padded)
                pl.BlockSpec((1, _LANE), lambda i: (0, 0)),     # b2p (128-lane padded)
            ],
            # last dim == full array dim (num_classes) -> legal, 43x less writeback
            out_specs=pl.BlockSpec((tile_b, num_classes), lambda i: (i, 0)),
        ),
        compiler_params=pltpu.CompilerParams(
            dimension_semantics=("parallel",),  # batch tiles shard across TCs on v7x
        ),
    )(xp, w1p, b1p, w2p, b2p)

    return out if Bp == B else out[:B]


def init_params(key, input_size, hidden_size):
    """Deterministic init mimicking nn.Linear's uniform(-1/sqrt(fan_in), +1/sqrt(fan_in)).
    Weights stored as (in, out), i.e. transposed relative to PyTorch's (out, in)."""
    k1, k2, k3, k4 = jax.random.split(key, 4)
    bound1 = 1.0 / jnp.sqrt(input_size)
    bound2 = 1.0 / jnp.sqrt(hidden_size)
    w1 = jax.random.uniform(k1, (input_size, hidden_size), jnp.float32, -bound1, bound1)
    b1 = jax.random.uniform(k2, (1, hidden_size), jnp.float32, -bound1, bound1)
    w2 = jax.random.uniform(k3, (hidden_size, 3), jnp.float32, -bound2, bound2)
    b2 = jax.random.uniform(k4, (1, 3), jnp.float32, -bound2, bound2)
    return w1, b1, w2, b2


if __name__ == "__main__":
    input_size = 32
    hidden_size = 32
    batch = 16

    key = jax.random.PRNGKey(0)
    kx, kp = jax.random.split(key)
    x = jax.random.normal(kx, (batch, input_size), jnp.float32)
    w1, b1, w2, b2 = init_params(kp, input_size, hidden_size)

    # One-time param packing (hoisted out of the per-call forward per perf review).
    w1p, b1p, w2p, b2p, n_cls = prepare_params(w1, b1, w2, b2)

    fwd = jax.jit(functools.partial(base_model_forward, num_classes=n_cls))
    out = jax.block_until_ready(fwd(x, w1p, b1p, w2p, b2p))

    # Reference check in plain JAX (same math as the PyTorch forward).
    h_ref = jax.nn.sigmoid(x @ w1 + b1)
    ref = jax.nn.softmax(h_ref @ w2 + b2, axis=1)

    assert out.shape == (batch, 3)
    # approx=True reciprocal on the EUP -> slightly looser tolerance
    assert jnp.allclose(out, ref, atol=2e-3, rtol=2e-3)
    assert jnp.allclose(jnp.sum(out, axis=1), jnp.ones((batch,)), atol=5e-3)

    print("KERNEL_OK")
</pallas_src>

<mosaic_0001>
module attributes {stable_mosaic.version = 11 : i64} {
  func.func @mlp_softmax_kernel(%arg0: i32, %arg1: memref<16x32xf32, #tpu.memory_space<vmem>>, %arg2: memref<32x128xf32, #tpu.memory_space<vmem>>, %arg3: memref<1x128xf32, #tpu.memory_space<vmem>>, %arg4: memref<128x128xf32, #tpu.memory_space<vmem>>, %arg5: memref<1x128xf32, #tpu.memory_space<vmem>>, %arg6: memref<16x3xf32, #tpu.memory_space<vmem>>) attributes {dimension_semantics = [#tpu.dimension_semantics<parallel>], iteration_bounds = array<i64: 1>, scalar_prefetch = 0 : i64, scratch_operands = 0 : i64, tpu.core_type = #tpu.core_type<tc>, window_params = [{transform_indices = @transform_0, window_bounds = array<i64: 16, 32>}, {pipeline_mode = #tpu.pipeline_mode<synchronous>, transform_indices = @transform_1, window_bounds = array<i64: 32, 128>}, {pipeline_mode = #tpu.pipeline_mode<synchronous>, transform_indices = @transform_2, window_bounds = array<i64: 1, 128>}, {pipeline_mode = #tpu.pipeline_mode<synchronous>, transform_indices = @transform_3, window_bounds = array<i64: 128, 128>}, {pipeline_mode = #tpu.pipeline_mode<synchronous>, transform_indices = @transform_4, window_bounds = array<i64: 1, 128>}, {transform_indices = @transform_5, window_bounds = array<i64: 16, 3>}]} {
    %c0 = arith.constant 0 : index
    %c0_0 = arith.constant 0 : index
    %0 = vector.load %arg1[%c0, %c0_0] : memref<16x32xf32, #tpu.memory_space<vmem>>, vector<16x32xf32>
    %c0_1 = arith.constant 0 : index
    %c0_2 = arith.constant 0 : index
    %1 = vector.load %arg2[%c0_1, %c0_2] : memref<32x128xf32, #tpu.memory_space<vmem>>, vector<32x128xf32>
    %cst = arith.constant dense<0.000000e+00> : vector<16x128xf32>
    %2 = tpu.matmul %0, %1, %cst {dimension_numbers = #tpu.dot_dimension_numbers<[1], [0], [0], [1], [0, 0, 1, 1], [], []>} : vector<16x32xf32>, vector<32x128xf32>, vector<16x128xf32> -> vector<16x128xf32>
    %c0_3 = arith.constant 0 : index
    %c0_4 = arith.constant 0 : index
    %3 = vector.load %arg3[%c0_3, %c0_4] : memref<1x128xf32, #tpu.memory_space<vmem>>, vector<1x128xf32>
    %4 = vector.broadcast %3 : vector<1x128xf32> to vector<16x128xf32>
    %5 = arith.addf %2, %4 : vector<16x128xf32>
    %cst_5 = arith.constant 5.000000e-01 : f32
    %6 = vector.broadcast %cst_5 : f32 to vector<16x128xf32>
    %7 = arith.mulf %6, %5 : vector<16x128xf32>
    %8 = math.tanh %7 : vector<16x128xf32>
    %cst_6 = arith.constant 1.000000e+00 : f32
    %9 = vector.broadcast %cst_6 : f32 to vector<16x128xf32>
    %10 = arith.addf %8, %9 : vector<16x128xf32>
    %cst_7 = arith.constant 5.000000e-01 : f32
    %11 = vector.broadcast %cst_7 : f32 to vector<16x128xf32>
    %12 = arith.mulf %11, %10 : vector<16x128xf32>
    %c0_8 = arith.constant 0 : index
    %c0_9 = arith.constant 0 : index
    %13 = vector.load %arg4[%c0_8, %c0_9] : memref<128x128xf32, #tpu.memory_space<vmem>>, vector<128x128xf32>
    %cst_10 = arith.constant dense<0.000000e+00> : vector<16x128xf32>
    %14 = tpu.matmul %12, %13, %cst_10 {dimension_numbers = #tpu.dot_dimension_numbers<[1], [0], [0], [1], [0, 0, 1, 1], [], []>} : vector<16x128xf32>, vector<128x128xf32>, vector<16x128xf32> -> vector<16x128xf32>
    %c0_11 = arith.constant 0 : index
    %c0_12 = arith.constant 0 : index
    %15 = vector.load %arg5[%c0_11, %c0_12] : memref<1x128xf32, #tpu.memory_space<vmem>>, vector<1x128xf32>
    %16 = vector.broadcast %15 : vector<1x128xf32> to vector<16x128xf32>
    %17 = arith.addf %14, %16 : vector<16x128xf32>
    %cst_13 = arith.constant dense<0xFF800000> : vector<16xf32>
    %18 = vector.multi_reduction <maximumf>, %17, %cst_13 [1] : vector<16x128xf32> to vector<16xf32>
    %19 = vector.shape_cast %18 : vector<16xf32> to vector<16x1xf32>
    %20 = vector.broadcast %19 : vector<16x1xf32> to vector<16x128xf32>
    %21 = arith.subf %17, %20 : vector<16x128xf32>
    %22 = math.exp %21 : vector<16x128xf32>
    %cst_14 = arith.constant dense<0.000000e+00> : vector<16xf32>
    %23 = vector.multi_reduction <add>, %22, %cst_14 [1] : vector<16x128xf32> to vector<16xf32>
    %24 = vector.shape_cast %23 : vector<16xf32> to vector<16x1xf32>
    %25 = tpu.reciprocal %24 {approx = true} : vector<16x1xf32> -> vector<16x1xf32>
    %26 = vector.broadcast %25 : vector<16x1xf32> to vector<16x128xf32>
    %27 = arith.mulf %22, %26 : vector<16x128xf32>
    %28 = vector.extract_strided_slice %27 {offsets = [0, 0], sizes = [16, 3], strides = [1, 1]} : vector<16x128xf32> to vector<16x3xf32>
    %c0_15 = arith.constant 0 : index
    %c0_16 = arith.constant 0 : index
    %29 = vector.load %arg6[%c0_15, %c0_16] : memref<16x3xf32, #tpu.memory_space<vmem>>, vector<16x3xf32>
    tpu.vector_store %arg6[%c0_15, %c0_16], %28 {strides = array<i32>} : memref<16x3xf32, #tpu.memory_space<vmem>>, vector<16x3xf32>,
    return
  }
  func.func @transform_0(%arg0: i32) -> (i32, i32) {
    %c0_i32 = arith.constant 0 : i32
    %c0_i32_0 = arith.constant 0 : i32
    return %arg0, %c0_i32 : i32, i32
  }
  func.func @transform_1(%arg0: i32) -> (i32, i32) {
    %c0_i32 = arith.constant 0 : i32
    %c0_i32_0 = arith.constant 0 : i32
    %c0_i32_1 = arith.constant 0 : i32
    return %c0_i32, %c0_i32_0 : i32, i32
  }
  func.func @transform_2(%arg0: i32) -> (i32, i32) {
    %c0_i32 = arith.constant 0 : i32
    %c0_i32_0 = arith.constant 0 : i32
    %c0_i32_1 = arith.constant 0 : i32
    return %c0_i32, %c0_i32_0 : i32, i32
  }
  func.func @transform_3(%arg0: i32) -> (i32, i32) {
    %c0_i32 = arith.constant 0 : i32
    %c0_i32_0 = arith.constant 0 : i32
    %c0_i32_1 = arith.constant 0 : i32
    return %c0_i32, %c0_i32_0 : i32, i32
  }
  func.func @transform_4(%arg0: i32) -> (i32, i32) {
    %c0_i32 = arith.constant 0 : i32
    %c0_i32_0 = arith.constant 0 : i32
    %c0_i32_1 = arith.constant 0 : i32
    return %c0_i32, %c0_i32_0 : i32, i32
  }
  func.func @transform_5(%arg0: i32) -> (i32, i32) {
    %c0_i32 = arith.constant 0 : i32
    %c0_i32_0 = arith.constant 0 : i32
    return %arg0, %c0_i32 : i32, i32
  }
}

</mosaic_0001>

<bundles_post_ra>
// kernel: base_model_forward.1
= control target key start
LH: loop header
LB: loop body
LE: loop exit
PB: predicated region body
PF: predicated region fallthrough
CT: control target
= control target key end

     0   :  { %10 = vsyncpa [#allocation3], 0  ;;  %s502_s0 = inlined_call_operand.hbm [shape: f32[16,32], index: 0, kind: input, shape index: {}]   ;;  %s503_s1 = inlined_call_operand.hbm [shape: f32[32,128], index: 1, kind: input, shape index: {}]   ;;  %s504_s2 = inlined_call_operand.vmem [shape: f32[1,128], index: 2, kind: input, shape index: {}]   ;;  %s505_s3 = inlined_call_operand.hbm [shape: f32[128,128], index: 3, kind: input, shape index: {}]   ;;  %s506_s4 = inlined_call_operand.vmem [shape: f32[1,128], index: 4, kind: input, shape index: {}]   ;;  %s507_s5 = inlined_call_operand.vmem [shape: f32[16,3], index: 5, kind: output, shape index: {}]  }
   0x1   :  { %11 = vsyncpa [#allocation5], 0  ;;  %s444_s18 = smov [#allocation4]   ;;  %s445_s20 = smov [#allocation2]  }
   0x2   :  { %s29_s19 = sshll.u32 %s444_s18, 4  ;;  %s17_s21 = sshll.u32 %s445_s20, 4  ;;  %s30_s19 = int_to_ptr.vmem [resolvable:$true] %s29_s19  ;;  %s18_s21 = int_to_ptr.vmem [resolvable:$true] %s17_s21 }
   0x3   :  { %s388_s22 = scalar_lea.vmem %s30_s19, 512  ;;  %p393_p1 = scmp.lt.s32.totalorder %s30_s19, %s30_s19 }
   0x4   :  { %p389_p0 = scmp.ne.s32.totalorder %s30_s19, %s388_s22  ;;  %p394_p2 = scmp.lt.s32.totalorder %s388_s22, %s388_s22 }
   0x6   :  { %p395_p3 = por %p394_p2, %p393_p1 }
   0x8   :  { %p396_p4 = pnand %p395_p3, %p389_p0 }
   0xa   :  { %399 = shalt.err (!%p396_p4)
}
   0xb   :  { %s446_s23 = smov 128   ;;  %s447_s24 = smov 8  }
   0xc   :  { %35 = dma.hbm_to_vmem [thread:$0]  %s503_s1, 512, %s30_s19, [#allocation5], %s446_s23, %s446_s23, %s447_s24  }
   0xd   :  { %s408_s27 = scalar_lea.vmem %s18_s21, 256  ;;  %p413_p6 = scmp.lt.s32.totalorder %s18_s21, %s18_s21 }
   0xe   :  { %p409_p5 = scmp.ne.s32.totalorder %s18_s21, %s408_s27  ;;  %p414_p7 = scmp.lt.s32.totalorder %s408_s27, %s408_s27 }
  0x10   :  { %p415_p8 = por %p414_p7, %p413_p6 }
  0x12   :  { %p416_p9 = pnand %p415_p8, %p409_p5 }
  0x14   :  { %419 = shalt.err (!%p416_p9)
}
  0x15   :  { %23 = dma.hbm_to_vmem [thread:$0]  %s502_s0, 256, %s18_s21, [#allocation3], %s446_s23, %s446_s23, %s447_s24  }
  0x16   :  { %s448_s30 = smov [#allocation6]  }
  0x17   :  { %s43_s6 = sshll.u32 %s448_s30, 4  ;;  %s44_s6 = int_to_ptr.vmem [resolvable:$true] %s43_s6 }
  0x18   :  { %s428_s7 = scalar_lea.vmem %s44_s6, 2048  ;;  %p433_p11 = scmp.lt.s32.totalorder %s44_s6, %s44_s6 }
  0x19   :  { %p429_p10 = scmp.ne.s32.totalorder %s44_s6, %s428_s7  ;;  %p434_p12 = scmp.lt.s32.totalorder %s428_s7, %s428_s7 }
  0x1b   :  { %p435_p13 = por %p434_p12, %p433_p11 }
  0x1d   :  { %p436_p0 = pnand %p435_p13, %p429_p10 }
  0x1f   :  { %439 = shalt.err (!%p436_p0)
}
  0x20   :  { %49 = dma.hbm_to_vmem [thread:$0]  %s505_s3, 2048, %s44_s6, [#allocation5], %s446_s23, %s446_s23, %s447_s24  }
  0x21   :  { %440 = dma.done.wait [#allocation3], 256  }
  0x22   :  { %441 = vsyncadd [#allocation3], 4294967040 }
  0x23   :  { %442 = dma.done.wait [#allocation5], 2560  }
  0x24   :  { %443 = vsyncadd [#allocation5], 4294964736  ;;  %vm74_vm0 = vcmask 261120   ;;  %v66_v0 = vld [vmem:[#allocation4 + $0x18] sm:$0xff]  ;;  %v65_v1 = vld [vmem:[#allocation4 + $0x10] sm:$0xff]  ;;  %vm280_vm1 = vcmask 23552  }
  0x25   :  { %317 = vmatprep.subr.mxu0 %v66_v0  ;;  %v61_v2 = vld [vmem:[#allocation2] sm:$0xff]  ;;  %v64_v3 = vld [vmem:[#allocation4 + $0x8] sm:$0xff]  ;;  %v179_v4 = vld [vmem:[#allocation6 + $0x78] sm:$0xff] }
  0x26   :  { %318 = vmatpush3.msra.mxu0 %v66_v0  ;;  %325 = vmatprep.mubr.msk.f32.mxu0 %vm74_vm0, %v61_v2  ;;  %v178_v5 = vld [vmem:[#allocation6 + $0x70] sm:$0xff]  ;;  %v63_v6 = vld [vmem:[#allocation4] sm:$0xff]  ;;  %v177_v7 = vld [vmem:[#allocation6 + $0x68] sm:$0xff] }
  0x27   :  { %319 = vmatprep.subr.mxu0 %v65_v1  ;;  %328 = vmatprep.subr.mxu1 %v179_v4  ;;  %v62_v8 = vld [vmem:[#allocation2 + $0x8] sm:$0xff]  ;;  %v176_v9 = vld [vmem:[#allocation6 + $0x60] sm:$0xff]  ;;  %v174_v11 = vld [vmem:[#allocation6 + $0x50] sm:$0xff] }
  0x28   :  { %320 = vmatpush3.msra.mxu0 %v65_v1  ;;  %329 = vmatpush3.msra.mxu1 %v179_v4  ;;  %v175_v10 = vld [vmem:[#allocation6 + $0x58] sm:$0xff]  ;;  %v173_v12 = vld [vmem:[#allocation6 + $0x48] sm:$0xff]  ;;  %v172_v13 = vld [vmem:[#allocation6 + $0x40] sm:$0xff] }
  0x29   :  { %321 = vmatprep.subr.mxu0 %v64_v3  ;;  %330 = vmatprep.subr.mxu1 %v178_v5  ;;  %v171_v14 = vld [vmem:[#allocation6 + $0x38] sm:$0xff]  ;;  %v170_v15 = vld [vmem:[#allocation6 + $0x30] sm:$0xff]  ;;  %v169_v16 = vld [vmem:[#allocation6 + $0x28] sm:$0xff] }
  0x2a   :  { %322 = vmatpush3.msra.mxu0 %v64_v3  ;;  %331 = vmatpush3.msra.mxu1 %v178_v5  ;;  %v168_v17 = vld [vmem:[#allocation6 + $0x20] sm:$0xff]  ;;  %v167_v18 = vld [vmem:[#allocation6 + $0x18] sm:$0xff]  ;;  %v166_v19 = vld [vmem:[#allocation6 + $0x10] sm:$0xff] }
  0x2b   :  { %323 = vmatprep.subr.mxu0 %v63_v6  ;;  %332 = vmatprep.subr.mxu1 %v177_v7  ;;  %v165_v20 = vld [vmem:[#allocation6 + $0x8] sm:$0xff]  ;;  %v164_v21 = vld [vmem:[#allocation6] sm:$0xff]  ;;  %v289_v22 = vld [vmem:[%s504_s2] ss:$0 sm:$0xff] }
  0x2c   :  { %324 = vmatpush3.msra.mxu0 %v63_v6  ;;  %333 = vmatpush3.msra.mxu1 %v177_v7  ;;  %v292_v36 = vld [vmem:[%s506_s4] ss:$0 sm:$0xff] }
  0x2d   :  { %326 = vmatmul.mubr.msk.f32.vlgmr.msra.gmra.mxu0 %vm74_vm0, %v62_v8  ;;  %334 = vmatprep.subr.mxu1 %v176_v9 }
  0x2e   :  { %335 = vmatpush3.msra.mxu1 %v176_v9 }
  0x2f   :  { %336 = vmatprep.subr.mxu1 %v175_v10 }
  0x30   :  { %337 = vmatpush3.msra.mxu1 %v175_v10 }
  0x31   :  { %338 = vmatprep.subr.mxu1 %v174_v11 }
  0x32   :  { %339 = vmatpush3.msra.mxu1 %v174_v11 }
  0x33   :  { %340 = vmatprep.subr.mxu1 %v173_v12 }
  0x34   :  { %341 = vmatpush3.msra.mxu1 %v173_v12 }
  0x35   :  { %342 = vmatprep.subr.mxu1 %v172_v13 }
  0x36   :  { %343 = vmatpush3.msra.mxu1 %v172_v13 }
  0x37   :  { %344 = vmatprep.subr.mxu1 %v171_v14 }
  0x38   :  { %345 = vmatpush3.msra.mxu1 %v171_v14 }
  0x39   :  { %346 = vmatprep.subr.mxu1 %v170_v15 }
  0x3a   :  { %347 = vmatpush3.msra.mxu1 %v170_v15 }
  0x3b   :  { %348 = vmatprep.subr.mxu1 %v169_v16 }
  0x3c   :  { %349 = vmatpush3.msra.mxu1 %v169_v16 }
  0x3d   :  { %350 = vmatprep.subr.mxu1 %v168_v17 }
  0x3e   :  { %351 = vmatpush3.msra.mxu1 %v168_v17 }
  0x3f   :  { %352 = vmatprep.subr.mxu1 %v167_v18 }
  0x40   :  { %353 = vmatpush3.msra.mxu1 %v167_v18 }
  0x41   :  { %354 = vmatprep.subr.mxu1 %v166_v19 }
  0x42   :  { %355 = vmatpush3.msra.mxu1 %v166_v19 }
  0x43   :  { %356 = vmatprep.subr.mxu1 %v165_v20 }
  0x44   :  { %357 = vmatpush3.msra.mxu1 %v165_v20 }
  0x45   :  { %358 = vmatprep.subr.mxu1 %v164_v21 }
  0x46   :  { %359 = vmatpush3.msra.mxu1 %v164_v21 }
  0xed   :  { %v327_v23 = vpop.f32.mrf.mxu0 }
  0xee   :  { %v153_v24 = vadd.f32 %v327_v23, %v289_v22 }
  0xef   :  { %v147_v25 = vpop.f32.mrf.mxu0 }
  0xf0   :  { %v157_v26 = vmul.f32 0.5, %v153_v24  ;;  %v148_v27 = vadd.f32 %v289_v22, %v147_v25 }
  0xf2   :  { %368 = vtanh.f32 %v157_v26  ;;  %v156_v28 = vmul.f32 0.5, %v148_v27 }
  0xf4   :  { %370 = vtanh.f32 %v156_v28 }
  0xff   :  { %v369_v29 = vpop.eup %368 }
 0x100   :  { %v161_v31 = vadd.f32 1.0, %v369_v29 }
 0x101   :  { %v371_v30 = vpop.eup %370 }
 0x102   :  { %v160_v32 = vadd.f32 1.0, %v371_v30  ;;  %v163_v34 = vmul.f32 0.5, %v161_v31 }
 0x104   :  { %v162_v33 = vmul.f32 0.5, %v160_v32 }
 0x106   :  { %360 = vmatprep.mubr.f32.mxu1 %v162_v33 }
 0x107   :  { %361 = vmatmul.mubr.f32.vlgmr.msra.gmra.mxu1 %v163_v34 }
 0x1c7   :  { %v362_v35 = vpop.f32.mrf.mxu1 }
 0x1c8   :  { %v259_v39 = vadd.f32 %v362_v35, %v292_v36 }
 0x1c9   :  { %v253_v37 = vpop.f32.mrf.mxu1 }
 0x1ca   :  { %v254_v38 = vadd.f32 %v292_v36, %v253_v37 }
 0x1cc   :  { %262 = vmax.xlane.f32.xlu0 %v254_v38 }
 0x1d0   :  { %264 = vmax.xlane.f32.xlu0 %v259_v39 }
 0x255   :  { %v263_v40 = vpop.xlane.xlu0 %262 }
 0x256   :  { %v266_v41 = vsub.f32 %v254_v38, %v263_v40 }
 0x258   :  { %v268_v42 = vmul.f32 1.442695, %v266_v41 }
 0x259   :  { %v265_v43 = vpop.xlane.xlu0 %264 }
 0x25a   :  { %372 = vpow2.f32 %v268_v42  ;;  %v267_v44 = vsub.f32 %v259_v39, %v265_v43 }
 0x25c   :  { %v270_v45 = vmul.f32 1.442695, %v267_v44 }
 0x25e   :  { %374 = vpow2.f32 %v270_v45 }
 0x267   :  { %v373_v46 = vpop.eup %372 }
 0x268   :  { %272 = vadd.xlane.f32.xlu1 %v373_v46 }
 0x26b   :  { %v375_v47 = vpop.eup %374 }
 0x26c   :  { %274 = vadd.xlane.f32.xlu1 %v375_v47 }
 0x2f1   :  { %v273_v48 = vpop.xlane.xlu1 %272 }
 0x2f2   :  { %376 = vrcp.f32 %v273_v48 }
 0x2f5   :  { %v275_v49 = vpop.xlane.xlu1 %274 }
 0x2f6   :  { %378 = vrcp.f32 %v275_v49 }
 0x2ff   :  { %v377_v50 = vpop.eup %376 }
 0x300   :  { %v278_v51 = vmul.f32 %v377_v50, %v373_v46 }
 0x302   :  { %281 = vst.msk [vmem:[%s507_s5] sm:$0xff] %vm280_vm1, %v278_v51 }
 0x303   :  { %v379_v52 = vpop.eup %378 }
 0x304   :  { %v279_v53 = vmul.f32 %v379_v52, %v375_v47 }
 0x306   :  { %282 = vst.msk [vmem:[%s507_s5 + $0x8] sm:$0xff] %vm280_vm1, %v279_v53 }
 0x307   :  { %287 = vsyncpa [#allocation3], 1 }
 0x308   :  { %288 = vsyncpa [#allocation5], 1 }

</bundles_post_ra>
